<compile_context>
chip_gen: v5e
topology: v5e:2x2
jax: 0.10.0
libtpu: 0.0.40
codegen_flags: <defaults>
</compile_context>

<pallas_src>
import functools

import jax
import jax.numpy as jnp
from jax import lax
from jax.experimental import pallas as pl
from jax.experimental.pallas import tpu as pltpu

LANES = 128
SUBLANES = 8
TARGET_ROW_TILE = 8192   # (8192, 128) f32 tile = 4 MiB, 8 MiB double-buffered
MAX_ACCUMULATORS = 8     # independent (8,128) accumulators for VALU ILP


def _entropy_kernel(x_ref, o_ref, acc_ref, *, row_tile, blocks_per_chunk,
                    total_blocks, valid_rows, n_acc):
    c = pl.program_id(0)   # parallel chunk axis (megacore on v7x)
    j = pl.program_id(1)   # arbitrary reduction axis

    @pl.when(j == 0)
    def _init():
        acc_ref[...] = jnp.zeros_like(acc_ref)

    logical_block = c * blocks_per_chunk + j
    block_start = logical_block * row_tile
    is_real = logical_block < total_blocks            # overrun step of last chunk?
    is_full = block_start + row_tile <= valid_rows    # every row of tile valid?

    sub_rows = row_tile // n_acc

    def accumulate(x):
        # x: (row_tile, LANES) clipped f32.  Accumulate +x*log(x); the single
        # negation happens in the epilogue.  The reshape only splits the
        # leading (row) dim, so it is a free view (sublane/lane tiling
        # untouched), and the n_acc independent partial sums keep each add
        # chain short (ILP across VALU slots).
        term = x * jnp.log(x)
        t = term.reshape(n_acc, sub_rows // SUBLANES, SUBLANES, LANES)
        acc_ref[...] += t.sum(axis=1)

    # Fast path (common case): no per-element mask work at all.
    @pl.when(is_full)
    def _fast():
        x = jnp.clip(x_ref[...].astype(jnp.float32), 1e-8, 1.0)
        accumulate(x)

    # Masked path: only the final partial tile of the aligned prefix takes
    # this branch; overrun steps (is_real == False) skip compute entirely.
    @pl.when(jnp.logical_and(is_real, jnp.logical_not(is_full)))
    def _masked():
        row = lax.broadcasted_iota(jnp.int32, (row_tile, LANES), 0)
        valid = block_start + row < valid_rows
        x = jnp.clip(x_ref[...].astype(jnp.float32), 1e-8, 1.0)
        # Invalid rows (garbage from the ragged last DMA) -> 1.0 so that
        # x*log(x) == 0 there; where() also squashes NaN garbage after clip.
        x = jnp.where(valid, x, 1.0)
        accumulate(x)

    @pl.when(j == pl.num_programs(1) - 1)
    def _finalize():
        # Fold the n_acc accumulators and apply the single negation.
        o_ref[...] = -acc_ref[...].sum(axis=0)[None, :, :]


def _plain_entropy_f32(v):
    vc = jnp.clip(v.astype(jnp.float32), 1e-8, 1.0)
    return jnp.sum(-vc * jnp.log(vc))


def entropy_loss(x: jax.Array) -> jax.Array:
    """Pallas implementation of EntropyLoss.forward. Returns a scalar."""
    orig_dtype = x.dtype
    flat = x.reshape(-1)
    n = flat.size

    chunk_elems = SUBLANES * LANES                 # 1024
    n_aligned = (n // chunk_elems) * chunk_elems

    # Ragged tail (<1024 elements) reduced in plain JAX: avoids any
    # full-tensor pad copy in HBM for non-aligned inputs.
    if n_aligned == n:
        tail_sum = jnp.float32(0.0)
    else:
        tail_sum = _plain_entropy_f32(flat[n_aligned:])

    if n_aligned == 0:
        return tail_sum.astype(orig_dtype)

    rows = n_aligned // LANES                      # always a multiple of 8
    if n_aligned == n:
        x2d = flat.reshape(rows, LANES)
    else:
        x2d = flat[:n_aligned].reshape(rows, LANES)

    row_tile = min(TARGET_ROW_TILE, rows)          # multiple of 8
    total_blocks = pl.cdiv(rows, row_tile)

    # Number of independent accumulators; must split the tile rows into whole
    # (8,128) vreg groups.
    n_acc = MAX_ACCUMULATORS
    while n_acc > 1 and row_tile % (n_acc * SUBLANES) != 0:
        n_acc //= 2

    # Leading parallel axis so v7x's two TensorCores split the blocks; skip
    # it for small grids where the dual epilogue / dead tile outweigh it.
    num_chunks = 2 if total_blocks >= 8 else 1
    blocks_per_chunk = pl.cdiv(total_blocks, num_chunks)
    grid = (num_chunks, blocks_per_chunk)

    kernel = functools.partial(
        _entropy_kernel,
        row_tile=row_tile,
        blocks_per_chunk=blocks_per_chunk,
        total_blocks=total_blocks,
        valid_rows=rows,
        n_acc=n_acc,
    )

    def in_map(c, j):
        # Clamp so the (at most one) overrun step of the last chunk stays in
        # bounds; its compute is skipped inside the kernel.
        return (jnp.minimum(c * blocks_per_chunk + j, total_blocks - 1), 0)

    partials = pl.pallas_call(
        kernel,
        out_shape=jax.ShapeDtypeStruct((num_chunks, SUBLANES, LANES),
                                       jnp.float32),
        grid_spec=pltpu.PrefetchScalarGridSpec(
            num_scalar_prefetch=0,
            grid=grid,
            in_specs=[pl.BlockSpec((row_tile, LANES), in_map)],
            out_specs=pl.BlockSpec((1, SUBLANES, LANES),
                                   lambda c, j: (c, 0, 0)),
            scratch_shapes=[pltpu.VMEM((n_acc, SUBLANES, LANES), jnp.float32)],
        ),
        compiler_params=pltpu.CompilerParams(
            dimension_semantics=("parallel", "arbitrary"),
            vmem_limit_bytes=32 * 1024 * 1024,
        ),
    )(x2d)

    # Final tiny cross-chunk / cross-lane reduce in plain JAX.
    # Note: accumulation is f32 even for bf16/fp16 inputs (more accurate than
    # PyTorch's in-dtype sum), then cast back to the input dtype.
    return (jnp.sum(partials) + tail_sum).astype(orig_dtype)


def entropy_loss_ref(x: jax.Array) -> jax.Array:
    """Pure-JAX reference matching the PyTorch module."""
    xc = jnp.clip(x, 1e-8, 1.0)
    return jnp.sum(-xc * jnp.log(xc))


if __name__ == "__main__":
    key = jax.random.PRNGKey(0)

    # Small NCHW-like probability map (lane-aligned; single full tile).
    x = jax.random.uniform(key, (2, 4, 16, 16), dtype=jnp.float32)
    out = entropy_loss(x)
    jax.block_until_ready(out)
    ref = entropy_loss_ref(x)
    assert jnp.allclose(out, ref, rtol=1e-5, atol=1e-5), (out, ref)

    # Odd-sized input: exercises the plain-JAX ragged-tail path.
    x_odd = jax.random.uniform(jax.random.PRNGKey(1), (3, 5, 7, 11),
                               dtype=jnp.float32)
    out_odd = entropy_loss(x_odd)
    jax.block_until_ready(out_odd)
    ref_odd = entropy_loss_ref(x_odd)
    assert jnp.allclose(out_odd, ref_odd, rtol=1e-5, atol=1e-5), (out_odd, ref_odd)

    # Medium input: >1 block with a partial last block -> exercises the
    # in-kernel masked path (rows = 8320 > row_tile = 8192).
    x_med = jax.random.uniform(jax.random.PRNGKey(2), (16, 4, 128, 130),
                               dtype=jnp.float32)
    out_med = entropy_loss(x_med)
    jax.block_until_ready(out_med)
    ref_med = entropy_loss_ref(x_med)
    assert jnp.allclose(out_med, ref_med, rtol=1e-5, atol=1e-4), (out_med, ref_med)

    print("KERNEL_OK")
</pallas_src>

<mosaic_0001>
module attributes {stable_mosaic.version = 11 : i64} {
  func.func @_entropy_kernel(%arg0: i32, %arg1: i32, %arg2: memref<16x128xf32, #tpu.memory_space<vmem>>, %arg3: memref<1x8x128xf32, #tpu.memory_space<vmem>>, %arg4: memref<2x8x128xf32, #tpu.memory_space<vmem>>) attributes {dimension_semantics = [#tpu.dimension_semantics<parallel>, #tpu.dimension_semantics<arbitrary>], iteration_bounds = array<i64: 1, 1>, scalar_prefetch = 0 : i64, scratch_operands = 1 : i64, tpu.core_type = #tpu.core_type<tc>, window_params = [{transform_indices = @transform_0, window_bounds = array<i64: 16, 128>}, {transform_indices = @transform_1, window_bounds = array<i64: 1, 8, 128>}]} {
    %c0_i32 = arith.constant 0 : i32
    %0 = arith.cmpi eq, %arg1, %c0_i32 : i32
    %1 = arith.extui %0 : i1 to i32
    %c0_i32_0 = arith.constant 0 : i32
    %2 = arith.cmpi ne, %1, %c0_i32_0 : i32
    scf.if %2 {
      %cst = arith.constant 0.000000e+00 : f32
      %18 = vector.broadcast %cst : f32 to vector<2x8x128xf32>
      %c0 = arith.constant 0 : index
      %c0_8 = arith.constant 0 : index
      %c0_9 = arith.constant 0 : index
      %19 = vector.load %arg4[%c0, %c0_8, %c0_9] : memref<2x8x128xf32, #tpu.memory_space<vmem>>, vector<2x8x128xf32>
      tpu.vector_store %arg4[%c0, %c0_8, %c0_9], %18 {strides = array<i32>} : memref<2x8x128xf32, #tpu.memory_space<vmem>>, vector<2x8x128xf32>,
    } else {
    }
    %c1_i32 = arith.constant 1 : i32
    %3 = arith.muli %arg0, %c1_i32 : i32
    %4 = arith.addi %3, %arg1 : i32
    %c16_i32 = arith.constant 16 : i32
    %5 = arith.muli %4, %c16_i32 : i32
    %c1_i32_1 = arith.constant 1 : i32
    %6 = arith.cmpi slt, %4, %c1_i32_1 : i32
    %c16_i32_2 = arith.constant 16 : i32
    %7 = arith.addi %5, %c16_i32_2 : i32
    %c16_i32_3 = arith.constant 16 : i32
    %8 = arith.cmpi sle, %7, %c16_i32_3 : i32
    %9 = arith.extui %8 : i1 to i32
    %c0_i32_4 = arith.constant 0 : i32
    %10 = arith.cmpi ne, %9, %c0_i32_4 : i32
    scf.if %10 {
      %c0 = arith.constant 0 : index
      %c0_8 = arith.constant 0 : index
      %18 = vector.load %arg2[%c0, %c0_8] : memref<16x128xf32, #tpu.memory_space<vmem>>, vector<16x128xf32>
      %cst = arith.constant 9.99999993E-9 : f32
      %cst_9 = arith.constant 1.000000e+00 : f32
      %19 = vector.broadcast %cst : f32 to vector<16x128xf32>
      %20 = arith.maximumf %19, %18 : vector<16x128xf32>
      %21 = vector.broadcast %cst_9 : f32 to vector<16x128xf32>
      %22 = arith.minimumf %21, %20 : vector<16x128xf32>
      %23 = math.log %22 : vector<16x128xf32>
      %24 = arith.mulf %22, %23 : vector<16x128xf32>
      %25 = vector.shape_cast %24 : vector<16x128xf32> to vector<2x1x8x128xf32>
      %c0_10 = arith.constant 0 : index
      %c0_11 = arith.constant 0 : index
      %c0_12 = arith.constant 0 : index
      %26 = vector.load %arg4[%c0_10, %c0_11, %c0_12] : memref<2x8x128xf32, #tpu.memory_space<vmem>>, vector<2x8x128xf32>
      %cst_13 = arith.constant dense<0.000000e+00> : vector<2x8x128xf32>
      %27 = vector.multi_reduction <add>, %25, %cst_13 [1] : vector<2x1x8x128xf32> to vector<2x8x128xf32>
      %28 = arith.addf %26, %27 : vector<2x8x128xf32>
      %c0_14 = arith.constant 0 : index
      %c0_15 = arith.constant 0 : index
      %c0_16 = arith.constant 0 : index
      %29 = vector.load %arg4[%c0_14, %c0_15, %c0_16] : memref<2x8x128xf32, #tpu.memory_space<vmem>>, vector<2x8x128xf32>
      tpu.vector_store %arg4[%c0_14, %c0_15, %c0_16], %28 {strides = array<i32>} : memref<2x8x128xf32, #tpu.memory_space<vmem>>, vector<2x8x128xf32>,
    } else {
    }
    %true = arith.constant true
    %11 = arith.xori %8, %true : i1
    %12 = arith.andi %6, %11 : i1
    %13 = arith.extui %12 : i1 to i32
    %c0_i32_5 = arith.constant 0 : i32
    %14 = arith.cmpi ne, %13, %c0_i32_5 : i32
    scf.if %14 {
      %18 = tpu.iota {dimensions = array<i32: 0>} : vector<16x128xi32>
      %19 = vector.broadcast %5 : i32 to vector<16x128xi32>
      %20 = arith.addi %19, %18 : vector<16x128xi32>
      %c16_i32_8 = arith.constant 16 : i32
      %21 = vector.broadcast %c16_i32_8 : i32 to vector<16x128xi32>
      %22 = arith.cmpi slt, %20, %21 : vector<16x128xi32>
      %c0 = arith.constant 0 : index
      %c0_9 = arith.constant 0 : index
      %23 = vector.load %arg2[%c0, %c0_9] : memref<16x128xf32, #tpu.memory_space<vmem>>, vector<16x128xf32>
      %cst = arith.constant 9.99999993E-9 : f32
      %cst_10 = arith.constant 1.000000e+00 : f32
      %24 = vector.broadcast %cst : f32 to vector<16x128xf32>
      %25 = arith.maximumf %24, %23 : vector<16x128xf32>
      %26 = vector.broadcast %cst_10 : f32 to vector<16x128xf32>
      %27 = arith.minimumf %26, %25 : vector<16x128xf32>
      %cst_11 = arith.constant 1.000000e+00 : f32
      %28 = vector.broadcast %cst_11 : f32 to vector<16x128xf32>
      %29 = arith.select %22, %27, %28 : vector<16x128xi1>, vector<16x128xf32>
      %30 = math.log %29 : vector<16x128xf32>
      %31 = arith.mulf %29, %30 : vector<16x128xf32>
      %32 = vector.shape_cast %31 : vector<16x128xf32> to vector<2x1x8x128xf32>
      %c0_12 = arith.constant 0 : index
      %c0_13 = arith.constant 0 : index
      %c0_14 = arith.constant 0 : index
      %33 = vector.load %arg4[%c0_12, %c0_13, %c0_14] : memref<2x8x128xf32, #tpu.memory_space<vmem>>, vector<2x8x128xf32>
      %cst_15 = arith.constant dense<0.000000e+00> : vector<2x8x128xf32>
      %34 = vector.multi_reduction <add>, %32, %cst_15 [1] : vector<2x1x8x128xf32> to vector<2x8x128xf32>
      %35 = arith.addf %33, %34 : vector<2x8x128xf32>
      %c0_16 = arith.constant 0 : index
      %c0_17 = arith.constant 0 : index
      %c0_18 = arith.constant 0 : index
      %36 = vector.load %arg4[%c0_16, %c0_17, %c0_18] : memref<2x8x128xf32, #tpu.memory_space<vmem>>, vector<2x8x128xf32>
      tpu.vector_store %arg4[%c0_16, %c0_17, %c0_18], %35 {strides = array<i32>} : memref<2x8x128xf32, #tpu.memory_space<vmem>>, vector<2x8x128xf32>,
    } else {
    }
    %c0_i32_6 = arith.constant 0 : i32
    %15 = arith.cmpi eq, %arg1, %c0_i32_6 : i32
    %16 = arith.extui %15 : i1 to i32
    %c0_i32_7 = arith.constant 0 : i32
    %17 = arith.cmpi ne, %16, %c0_i32_7 : i32
    scf.if %17 {
      %c0 = arith.constant 0 : index
      %c0_8 = arith.constant 0 : index
      %c0_9 = arith.constant 0 : index
      %18 = vector.load %arg4[%c0, %c0_8, %c0_9] : memref<2x8x128xf32, #tpu.memory_space<vmem>>, vector<2x8x128xf32>
      %cst = arith.constant dense<0.000000e+00> : vector<8x128xf32>
      %19 = vector.multi_reduction <add>, %18, %cst [0] : vector<2x8x128xf32> to vector<8x128xf32>
      %20 = vector.shape_cast %19 : vector<8x128xf32> to vector<1x8x128xf32>
      %cst_10 = arith.constant 0.000000e+00 : f32
      %21 = vector.broadcast %cst_10 : f32 to vector<1x8x128xf32>
      %22 = arith.subf %21, %20 : vector<1x8x128xf32>
      %c0_11 = arith.constant 0 : index
      %c0_12 = arith.constant 0 : index
      %c0_13 = arith.constant 0 : index
      %23 = vector.load %arg3[%c0_11, %c0_12, %c0_13] : memref<1x8x128xf32, #tpu.memory_space<vmem>>, vector<1x8x128xf32>
      tpu.vector_store %arg3[%c0_11, %c0_12, %c0_13], %22 {strides = array<i32>} : memref<1x8x128xf32, #tpu.memory_space<vmem>>, vector<1x8x128xf32>,
    } else {
    }
    return
  }
  func.func @transform_0(%arg0: i32, %arg1: i32) -> (i32, i32) {
    %c1_i32 = arith.constant 1 : i32
    %0 = arith.muli %arg0, %c1_i32 : i32
    %1 = arith.addi %0, %arg1 : i32
    %c0_i32 = arith.constant 0 : i32
    %2 = arith.minsi %1, %c0_i32 : i32
    %c0_i32_0 = arith.constant 0 : i32
    %c0_i32_1 = arith.constant 0 : i32
    return %2, %c0_i32_0 : i32, i32
  }
  func.func @transform_1(%arg0: i32, %arg1: i32) -> (i32, i32, i32) {
    %c0_i32 = arith.constant 0 : i32
    %c0_i32_0 = arith.constant 0 : i32
    %c0_i32_1 = arith.constant 0 : i32
    return %arg0, %c0_i32, %c0_i32_0 : i32, i32, i32
  }
}

</mosaic_0001>

<bundles_post_ra>
// kernel: tpu_custom_call.1
= control target key start
LH: loop header
LB: loop body
LE: loop exit
PB: predicated region body
PF: predicated region fallthrough
CT: control target
= control target key end

     0   :  { %6 = vsyncpa [#allocation4], 0  ;;  %s211_s0 = inlined_call_operand.hbm [shape: f32[16,128], index: 0, kind: input, shape index: {}]   ;;  %s212_s1 = inlined_call_operand.hbm [shape: f32[1,8,128], index: 1, kind: output, shape index: {}]  }
   0x1   :  { %7 = vsyncpa [#allocation5], 0  ;;  %s18_s8 = sshll.u32 %s211_s0, 4  ;;  %s191_s9 = smov [#allocation3]   ;;  %s19_s8 = int_to_ptr.hbm [resolvable:$true] %s18_s8 }
   0x2   :  { %s20_s10 = sshll.u32 %s191_s9, 4  ;;  %s192_s11 = smov 128   ;;  %s21_s10 = int_to_ptr.vmem [resolvable:$true] %s20_s10 }
   0x3   :  { %s193_s12 = smov 8  }
   0x4   :  { %26 = dma.hbm_to_vmem [thread:$0]  %s19_s8, 256, %s21_s10, [#allocation4], %s192_s11, %s192_s11, %s193_s12  }
   0x5   :  { %187 = dma.done.wait [#allocation4], 256  }
   0x6   :  { %188 = vsyncadd [#allocation4], 4294967040  ;;  %v49_v0 = vld [vmem:[#allocation3] sm:$0xff]  ;;  %v50_v1 = vld [vmem:[#allocation3 + $0x8] sm:$0xff]  ;;  %s194_s0 = smov [#allocation6]   ;;  %s119_s16 = sshll.u32 %s212_s1, 4  ;;  %s120_s16 = int_to_ptr.hbm [resolvable:$true] %s119_s16 }
   0x7   :  { %v51_v2 = vmax.f32 %v49_v0, 1e-08  ;;  %v52_v3 = vmax.f32 %v50_v1, 1e-08  ;;  %s117_s13 = sshll.u32 %s194_s0, 4  ;;  %s118_s13 = int_to_ptr.vmem [resolvable:$true] %s117_s13 }
   0x9   :  { %v53_v4 = vmin.f32 %v51_v2, 1.0  ;;  %v54_v5 = vmin.f32 %v52_v3, 1.0 }
   0xb   :  { %135 = vlog2.f32 %v53_v4 }
   0xc   :  { %137 = vlog2.f32 %v54_v5 }
  0x11   :  { %v136_v6 = vpop.eup %135 }
  0x12   :  { %v138_v7 = vpop.eup %137  ;;  %v56_v8 = vmul.f32 0.6931472, %v136_v6 }
  0x13   :  { %v58_v9 = vmul.f32 0.6931472, %v138_v7 }
  0x14   :  { %v59_v10 = vmul.f32 %v56_v8, %v53_v4 }
  0x15   :  { %v60_v11 = vmul.f32 %v58_v9, %v54_v5 }
  0x17   :  { %v109_v12 = vadd.f32 %v60_v11, %v59_v10 }
  0x19   :  { %v110_v13 = vsub.f32 0.0, %v109_v12 }
  0x1b   :  { %111 = vst [vmem:[#allocation6] sm:$0xff] %v110_v13 }
  0x1c   :  { %122 = dma.vmem_to_hbm [thread:$0]  %s118_s13, 128, %s120_s16, [#allocation5]  }
  0x1d   :  { %189 = dma.done.wait [#allocation5], 128  }
  0x1e   :  { %190 = vsyncadd [#allocation5], 4294967168 }
  0x1f   :  { %127 = vsyncpa [#allocation4], 1 }
  0x20   :  { %128 = vsyncpa [#allocation5], 1 }

</bundles_post_ra>
